<compile_context>
chip_gen: v6e
topology: v6e:2x2x1
jax: 0.10.0
libtpu: 0.0.40
codegen_flags: <defaults>
</compile_context>

<pallas_src>
import functools

import jax
import jax.numpy as jnp
from jax.experimental import pallas as pl
from jax.experimental.pallas import tpu as pltpu

_LANE = 512        # lane-dense last dim (multiple of 128)
_TILE_ROWS = 512   # sublane tile (multiple of 8); 512x512 f32 block = 1 MiB

# Python-side counter mirroring the module's global `noise_seed`.
# NOTE: like the PyTorch original, this bump happens in Python; under jax.jit
# it executes only at trace time, so thread a traced counter through the train
# state if a fresh seed per jitted step is required.
_noise_seed = 0


def _noise_kernel_tpu(seed_ref, x_ref, o_ref, *, mean, stddev):
    """x + N(mean, stddev^2); noise drawn from the TPU hardware PRNG."""
    # Unique seed per grid block -> independent noise per tile.
    pltpu.prng_seed(seed_ref[0] + pl.program_id(0))
    z = pltpu.stateful_normal(x_ref.shape, jnp.float32)
    noise = z * jnp.float32(stddev) + jnp.float32(mean)
    o_ref[...] = (x_ref[...].astype(jnp.float32) + noise).astype(o_ref.dtype)


def _noise_kernel_add(x_ref, z_ref, o_ref, *, mean, stddev):
    """Fused x + z * stddev + mean for a precomputed standard normal z."""
    noise = z_ref[...].astype(jnp.float32) * jnp.float32(stddev) + jnp.float32(mean)
    o_ref[...] = (x_ref[...].astype(jnp.float32) + noise).astype(o_ref.dtype)


def _as_lane_dense_2d(x):
    """Flatten to a (rows_padded, _LANE) lane-dense view; returns tile info."""
    total = x.size
    rows = -(-total // _LANE)                          # cdiv
    tile_rows = min(_TILE_ROWS, ((rows + 7) // 8) * 8)  # multiple of 8
    rows_padded = -(-rows // tile_rows) * tile_rows
    flat = x.reshape(-1)
    pad = rows_padded * _LANE - total
    if pad:
        flat = jnp.pad(flat, (0, pad))
    return flat.reshape(rows_padded, _LANE), tile_rows, total


def noise_layer(x, *, mean=0.0, stddev=1.0, training=True):
    """Pallas implementation of NoiseLayer.forward. x: any shape (e.g. NCHW)."""
    global _noise_seed
    if not training:
        return x

    _noise_seed += 1
    seed = _noise_seed

    orig_shape = x.shape
    x2, tile_rows, total = _as_lane_dense_2d(x)
    rows_padded = x2.shape[0]
    grid = (rows_padded // tile_rows,)
    block = (tile_rows, _LANE)
    nbytes = x2.size * x2.dtype.itemsize

    if jax.default_backend() == "tpu":
        out2 = pl.pallas_call(
            functools.partial(_noise_kernel_tpu, mean=mean, stddev=stddev),
            out_shape=jax.ShapeDtypeStruct(x2.shape, x2.dtype),
            grid_spec=pltpu.PrefetchScalarGridSpec(
                num_scalar_prefetch=1,                     # seed lands in SMEM
                grid=grid,
                in_specs=[pl.BlockSpec(block, lambda i, seed_ref: (i, 0))],
                out_specs=pl.BlockSpec(block, lambda i, seed_ref: (i, 0)),
            ),
            compiler_params=pltpu.CompilerParams(
                dimension_semantics=("parallel",),          # megacore sharding
            ),
            cost_estimate=pl.CostEstimate(
                flops=3 * x2.size, transcendentals=0, bytes_accessed=2 * nbytes),
        )(jnp.asarray([seed], dtype=jnp.int32), x2)
    else:
        # TODO(synk): pltpu.prng_seed / pltpu.stateful_normal have no lowering
        # off-TPU; draw the standard normal with jax.random and fuse only the
        # scale/shift/add in the kernel on non-TPU backends.
        z = jax.random.normal(jax.random.PRNGKey(seed), x2.shape, jnp.float32)
        out2 = pl.pallas_call(
            functools.partial(_noise_kernel_add, mean=mean, stddev=stddev),
            out_shape=jax.ShapeDtypeStruct(x2.shape, x2.dtype),
            grid=grid,
            in_specs=[pl.BlockSpec(block, lambda i: (i, 0)),
                      pl.BlockSpec(block, lambda i: (i, 0))],
            out_specs=pl.BlockSpec(block, lambda i: (i, 0)),
            compiler_params=pltpu.CompilerParams(
                dimension_semantics=("parallel",),
            ),
            cost_estimate=pl.CostEstimate(
                flops=3 * x2.size, transcendentals=0, bytes_accessed=3 * nbytes),
        )(x2, z)

    out = out2.reshape(-1)
    if out.size != total:
        out = out[:total]
    return out.reshape(orig_shape)


if __name__ == "__main__":
    # Small NCHW input consistent with a CNN feature map: (B=2, C=4, H=16, W=16).
    key = jax.random.PRNGKey(0)
    x = jax.random.normal(key, (2, 4, 16, 16), dtype=jnp.float32)

    # Training mode: adds unit-variance Gaussian noise.
    y = jax.block_until_ready(noise_layer(x, mean=0.0, stddev=1.0, training=True))
    assert y.shape == x.shape and y.dtype == x.dtype

    # Eval mode: identity passthrough.
    y_eval = jax.block_until_ready(noise_layer(x, training=False))
    assert bool(jnp.all(y_eval == x))

    # Sanity: noise was actually added and is roughly zero-mean / unit-std.
    noise = y - x
    m = float(jnp.mean(noise))
    s = float(jnp.std(noise))
    assert abs(m) < 0.25 and 0.7 < s < 1.3, (m, s)

    # Seed bump: a second training call must produce different noise.
    y2 = jax.block_until_ready(noise_layer(x, mean=0.0, stddev=1.0, training=True))
    assert not bool(jnp.all(y2 == y))

    print("KERNEL_OK")
</pallas_src>

<mosaic_0001>
module attributes {stable_mosaic.version = 11 : i64} {
  func.func @_noise_kernel_add(%arg0: i32, %arg1: memref<8x512xf32, #tpu.memory_space<vmem>>, %arg2: memref<8x512xf32, #tpu.memory_space<vmem>>, %arg3: memref<8x512xf32, #tpu.memory_space<vmem>>) attributes {dimension_semantics = [#tpu.dimension_semantics<parallel>], iteration_bounds = array<i64: 1>, scalar_prefetch = 0 : i64, scratch_operands = 0 : i64, tpu.core_type = #tpu.core_type<tc>, window_params = [{transform_indices = @transform_0, window_bounds = array<i64: 8, 512>}, {transform_indices = @transform_1, window_bounds = array<i64: 8, 512>}, {transform_indices = @transform_2, window_bounds = array<i64: 8, 512>}]} {
    %c0 = arith.constant 0 : index
    %c0_0 = arith.constant 0 : index
    %0 = vector.load %arg2[%c0, %c0_0] : memref<8x512xf32, #tpu.memory_space<vmem>>, vector<8x512xf32>
    %cst = arith.constant 1.000000e+00 : f32
    %1 = vector.broadcast %cst : f32 to vector<8x512xf32>
    %2 = arith.mulf %0, %1 : vector<8x512xf32>
    %cst_1 = arith.constant 0.000000e+00 : f32
    %3 = vector.broadcast %cst_1 : f32 to vector<8x512xf32>
    %4 = arith.addf %2, %3 : vector<8x512xf32>
    %c0_2 = arith.constant 0 : index
    %c0_3 = arith.constant 0 : index
    %5 = vector.load %arg1[%c0_2, %c0_3] : memref<8x512xf32, #tpu.memory_space<vmem>>, vector<8x512xf32>
    %6 = arith.addf %5, %4 : vector<8x512xf32>
    %c0_4 = arith.constant 0 : index
    %c0_5 = arith.constant 0 : index
    %7 = vector.load %arg3[%c0_4, %c0_5] : memref<8x512xf32, #tpu.memory_space<vmem>>, vector<8x512xf32>
    tpu.vector_store %arg3[%c0_4, %c0_5], %6 {strides = array<i32>} : memref<8x512xf32, #tpu.memory_space<vmem>>, vector<8x512xf32>,
    return
  }
  func.func @transform_0(%arg0: i32) -> (i32, i32) {
    %c0_i32 = arith.constant 0 : i32
    %c0_i32_0 = arith.constant 0 : i32
    return %arg0, %c0_i32 : i32, i32
  }
  func.func @transform_1(%arg0: i32) -> (i32, i32) {
    %c0_i32 = arith.constant 0 : i32
    %c0_i32_0 = arith.constant 0 : i32
    return %arg0, %c0_i32 : i32, i32
  }
  func.func @transform_2(%arg0: i32) -> (i32, i32) {
    %c0_i32 = arith.constant 0 : i32
    %c0_i32_0 = arith.constant 0 : i32
    return %arg0, %c0_i32 : i32, i32
  }
}

</mosaic_0001>

<bundles_post_ra>
// kernel: tpu_custom_call.1
= control target key start
LH: loop header
LB: loop body
LE: loop exit
PB: predicated region body
PF: predicated region fallthrough
CT: control target
= control target key end

     0   :  { %7 = vsyncpa [#allocation3], 0  ;;  %s168_s0 = inlined_call_operand.hbm [shape: f32[8,512], index: 0, kind: input, shape index: {}]   ;;  %s169_s1 = inlined_call_operand.hbm [shape: f32[8,512], index: 1, kind: input, shape index: {}]   ;;  %s170_s2 = inlined_call_operand.hbm [shape: f32[8,512], index: 2, kind: output, shape index: {}]  }
   0x1   :  { %8 = vsyncpa [#allocation6], 0 }
   0x2   :  { %9 = vsyncpa [#allocation4], 0  ;;  %s141_s9 = smov [#allocation2]   ;;  %s142_s11 = smov [#allocation5]  }
   0x3   :  { %s16_s10 = sshll.u32 %s141_s9, 4  ;;  %s26_s12 = sshll.u32 %s142_s11, 4  ;;  %s17_s10 = int_to_ptr.vmem [resolvable:$true] %s16_s10  ;;  %s27_s12 = int_to_ptr.vmem [resolvable:$true] %s26_s12 }
   0x4   :  { %s83_s13 = scalar_lea.vmem %s17_s10, 512  ;;  %p88_p1 = scmp.lt.s32.totalorder %s17_s10, %s17_s10 }
   0x5   :  { %p84_p0 = scmp.ne.s32.totalorder %s17_s10, %s83_s13  ;;  %p89_p2 = scmp.lt.s32.totalorder %s83_s13, %s83_s13 }
   0x7   :  { %p90_p3 = por %p89_p2, %p88_p1 }
   0x9   :  { %p91_p4 = pnand %p90_p3, %p84_p0 }
   0xb   :  { %94 = shalt.err (!%p91_p4)
}
   0xc   :  { %19 = dma.hbm_to_vmem [thread:$0]  %s168_s0, 512, %s17_s10, [#allocation3]  }
   0xd   :  { %s103_s16 = scalar_lea.vmem %s27_s12, 512  ;;  %p108_p6 = scmp.lt.s32.totalorder %s27_s12, %s27_s12 }
   0xe   :  { %p104_p5 = scmp.ne.s32.totalorder %s27_s12, %s103_s16  ;;  %p109_p7 = scmp.lt.s32.totalorder %s103_s16, %s103_s16 }
  0x10   :  { %p110_p8 = por %p109_p7, %p108_p6 }
  0x12   :  { %p111_p9 = pnand %p110_p8, %p104_p5 }
  0x14   :  { %114 = shalt.err (!%p111_p9)
}
  0x15   :  { %29 = dma.hbm_to_vmem [thread:$0]  %s169_s1, 512, %s27_s12, [#allocation6]  }
  0x16   :  { %135 = dma.done.wait [#allocation3], 512  }
  0x17   :  { %136 = vsyncadd [#allocation3], 4294966784 }
  0x18   :  { %137 = dma.done.wait [#allocation6], 512  }
  0x19   :  { %138 = vsyncadd [#allocation6], 4294966784  ;;  %v36_v0 = vld [vmem:[#allocation5] sm:$0xff]  ;;  %v37_v2 = vld [vmem:[#allocation5 + $0x8] sm:$0xff]  ;;  %s143_s19 = smov [#allocation7]  }
  0x1a   :  { %v44_v1 = vld [vmem:[#allocation2] sm:$0xff]  ;;  %s62_s0 = sshll.u32 %s143_s19, 4  ;;  %v45_v4 = vld [vmem:[#allocation2 + $0x8] sm:$0xff]  ;;  %v38_v5 = vld [vmem:[#allocation5 + $0x10] sm:$0xff]  ;;  %s63_s0 = int_to_ptr.vmem [resolvable:$true] %s62_s0 }
  0x1b   :  { %v48_v3 = vadd.f32 %v44_v1, %v36_v0  ;;  %v46_v6 = vld [vmem:[#allocation2 + $0x10] sm:$0xff]  ;;  %v49_v7 = vadd.f32 %v45_v4, %v37_v2  ;;  %v39_v9 = vld [vmem:[#allocation5 + $0x18] sm:$0xff]  ;;  %s115_s1 = scalar_lea.vmem %s63_s0, 512  ;;  %p120_p11 = scmp.lt.s32.totalorder %s63_s0, %s63_s0 }
  0x1c   :  { %v50_v8 = vadd.f32 %v46_v6, %v38_v5  ;;  %v47_v10 = vld [vmem:[#allocation2 + $0x18] sm:$0xff]  ;;  %p116_p10 = scmp.ne.s32.totalorder %s63_s0, %s115_s1  ;;  %p121_p12 = scmp.lt.s32.totalorder %s115_s1, %s115_s1 }
  0x1d   :  { %52 = vst [vmem:[#allocation7] sm:$0xff] %v48_v3  ;;  %v51_v11 = vadd.f32 %v47_v10, %v39_v9  ;;  %53 = vst [vmem:[#allocation7 + $0x8] sm:$0xff] %v49_v7 }
  0x1e   :  { %54 = vst [vmem:[#allocation7 + $0x10] sm:$0xff] %v50_v8  ;;  %p122_p13 = por %p121_p12, %p120_p11 }
  0x1f   :  { %55 = vst [vmem:[#allocation7 + $0x18] sm:$0xff] %v51_v11 }
  0x20   :  { %p123_p0 = pnand %p122_p13, %p116_p10 }
  0x22   :  { %126 = shalt.err (!%p123_p0)
}
  0x23   :  { %65 = dma.vmem_to_hbm [thread:$0]  %s63_s0, 512, %s170_s2, [#allocation4]  }
  0x24   :  { %139 = dma.done.wait [#allocation4], 512  }
  0x25   :  { %140 = vsyncadd [#allocation4], 4294966784 }
  0x26   :  { %69 = vsyncpa [#allocation3], 1 }
  0x27   :  { %70 = vsyncpa [#allocation6], 1 }
  0x28   :  { %71 = vsyncpa [#allocation4], 1 }

</bundles_post_ra>
